<compile_context>
chip_gen: v5e
topology: v5e:2x2
jax: 0.10.0
libtpu: 0.0.40
codegen_flags: <defaults>
</compile_context>

<pallas_src>
import jax
import jax.numpy as jnp
from jax.experimental import pallas as pl
from jax.experimental.pallas import tpu as pltpu


def _round_up(n, m):
    return ((n + m - 1) // m) * m


def single_neuron_kernel(x_ref, w_ref, b_ref, o_ref):
    # x_ref: (TB, Dp) VMEM   w_ref: (1, Dp) VMEM   b_ref: (1, 1) SMEM
    # o_ref: (1, TB) VMEM  (lane-dense output: batch maps to lanes)
    x = x_ref[...]                      # (TB, Dp)
    w = w_ref[...]                      # (1, Dp), broadcast on the VPU
    b = b_ref[0, 0]                     # scalar bias from SMEM
    # VPU multiply + cross-lane (XLU) reduction; this GEMV is HBM-bound, so the
    # MXU would be pure overhead here.
    s = jnp.sum(x * w, axis=-1)         # (TB,)
    o_ref[...] = (s + b)[None, :].astype(o_ref.dtype)


def single_neuron_forward(x, weight, bias, *, tb_cap=2048,
                          x_tile_budget_bytes=16 * 1024 * 1024):
    """x: (B, D) f32, weight: (1, D) f32, bias: (1,) f32 -> (B, 1) f32."""
    B, D = x.shape
    # Lane-align the feature dim; zero padding is exact (0 * w == 0).
    Dp = _round_up(max(D, 1), 128)

    # Batch tile: as large as possible while keeping the double-buffered x tile
    # inside a v7x-safe VMEM budget (64 MiB physical there vs 128 MiB v5e/v6e).
    bytes_per_row = Dp * 4  # f32
    max_tb = max(128, (x_tile_budget_bytes // (2 * bytes_per_row)) // 128 * 128)
    tb = min(tb_cap, max_tb)
    if B <= tb:
        # Single batch block: only needs sublane (x8) alignment.
        tb = _round_up(max(B, 8), 8)
    Bp = _round_up(B, tb)
    grid = (Bp // tb,)

    xp = x
    if (Bp, Dp) != (B, D):
        xp = jnp.zeros((Bp, Dp), x.dtype).at[:B, :D].set(x)
    wp = weight
    if Dp != D:
        wp = jnp.zeros((1, Dp), weight.dtype).at[:, :D].set(weight)
    b2 = bias.reshape(1, 1).astype(jnp.float32)

    out_row = pl.pallas_call(
        single_neuron_kernel,
        out_shape=jax.ShapeDtypeStruct((1, Bp), jnp.float32),
        grid=grid,
        in_specs=[
            pl.BlockSpec((tb, Dp), lambda i: (i, 0)),           # x batch tile
            pl.BlockSpec((1, Dp), lambda i: (0, 0)),            # weight (resident)
            pl.BlockSpec(memory_space=pltpu.MemorySpace.SMEM),  # bias scalar
        ],
        out_specs=pl.BlockSpec((1, tb), lambda i: (0, i)),      # lane-dense output
        compiler_params=pltpu.CompilerParams(
            dimension_semantics=("parallel",),    # megacore split on v7x
            vmem_limit_bytes=32 * 1024 * 1024,    # lift v5e's 16 MiB scoped default
        ),
    )(xp, wp, b2)

    # For very large D, a second "arbitrary" reduction grid axis over D-tiles with
    # a VMEM accumulator would bound per-tile VMEM further; not needed at these sizes.
    return out_row[0, :B].reshape(B, 1)


if __name__ == "__main__":
    key = jax.random.PRNGKey(0)

    def run_case(batch, input_size, k):
        kx, kw, kb = jax.random.split(k, 3)
        # nn.Linear default init: uniform in [-1/sqrt(fan_in), 1/sqrt(fan_in)].
        bound = 1.0 / jnp.sqrt(jnp.float32(input_size))
        weight = jax.random.uniform(kw, (1, input_size), jnp.float32, -bound, bound)
        bias = jax.random.uniform(kb, (1,), jnp.float32, -bound, bound)
        x = jax.random.normal(kx, (batch, input_size), jnp.float32)

        out = jax.block_until_ready(single_neuron_forward(x, weight, bias))
        ref = jnp.dot(x, weight.T, precision=jax.lax.Precision.HIGHEST) + bias
        assert out.shape == (batch, 1)
        assert jnp.allclose(out, ref, atol=1e-5, rtol=1e-5)

    # Small demo shape matching the module spec (single-tile path).
    run_case(batch=8, input_size=32, k=jax.random.fold_in(key, 0))
    # Gridded path: multiple batch tiles plus batch/feature padding.
    run_case(batch=2056, input_size=96, k=jax.random.fold_in(key, 1))

    print("KERNEL_OK")
</pallas_src>

<mosaic_0001>
module attributes {stable_mosaic.version = 11 : i64} {
  func.func @single_neuron_kernel(%arg0: i32, %arg1: memref<8x128xf32, #tpu.memory_space<vmem>>, %arg2: memref<1x128xf32, #tpu.memory_space<vmem>>, %arg3: memref<1x1xf32, #tpu.memory_space<smem>>, %arg4: memref<1x8xf32, #tpu.memory_space<vmem>>) attributes {dimension_semantics = [#tpu.dimension_semantics<parallel>], iteration_bounds = array<i64: 1>, scalar_prefetch = 0 : i64, scratch_operands = 0 : i64, tpu.core_type = #tpu.core_type<tc>, window_params = [{transform_indices = @transform_0, window_bounds = array<i64: 8, 128>}, {pipeline_mode = #tpu.pipeline_mode<synchronous>, transform_indices = @transform_1, window_bounds = array<i64: 1, 128>}, {transform_indices = @transform_2, window_bounds = array<i64: 1, 1>}, {transform_indices = @transform_3, window_bounds = array<i64: 1, 8>}]} {
    %c0 = arith.constant 0 : index
    %c0_0 = arith.constant 0 : index
    %0 = vector.load %arg1[%c0, %c0_0] : memref<8x128xf32, #tpu.memory_space<vmem>>, vector<8x128xf32>
    %c0_1 = arith.constant 0 : index
    %c0_2 = arith.constant 0 : index
    %1 = vector.load %arg2[%c0_1, %c0_2] : memref<1x128xf32, #tpu.memory_space<vmem>>, vector<1x128xf32>
    %c0_3 = arith.constant 0 : index
    %c0_4 = arith.constant 0 : index
    %2 = memref.load %arg3[%c0_3, %c0_4] : memref<1x1xf32, #tpu.memory_space<smem>>
    %3 = vector.broadcast %1 : vector<1x128xf32> to vector<8x128xf32>
    %4 = arith.mulf %0, %3 : vector<8x128xf32>
    %cst = arith.constant dense<0.000000e+00> : vector<8xf32>
    %5 = vector.multi_reduction <add>, %4, %cst [1] : vector<8x128xf32> to vector<8xf32>
    %6 = vector.broadcast %2 : f32 to vector<8xf32>
    %7 = arith.addf %5, %6 : vector<8xf32>
    %8 = vector.shape_cast %7 : vector<8xf32> to vector<1x8xf32>
    %c0_5 = arith.constant 0 : index
    %c0_6 = arith.constant 0 : index
    %9 = vector.load %arg4[%c0_5, %c0_6] : memref<1x8xf32, #tpu.memory_space<vmem>>, vector<1x8xf32>
    tpu.vector_store %arg4[%c0_5, %c0_6], %8 {strides = array<i32>} : memref<1x8xf32, #tpu.memory_space<vmem>>, vector<1x8xf32>,
    return
  }
  func.func @transform_0(%arg0: i32) -> (i32, i32) {
    %c0_i32 = arith.constant 0 : i32
    %c0_i32_0 = arith.constant 0 : i32
    return %arg0, %c0_i32 : i32, i32
  }
  func.func @transform_1(%arg0: i32) -> (i32, i32) {
    %c0_i32 = arith.constant 0 : i32
    %c0_i32_0 = arith.constant 0 : i32
    %c0_i32_1 = arith.constant 0 : i32
    return %c0_i32, %c0_i32_0 : i32, i32
  }
  func.func @transform_2(%arg0: i32) -> (i32, i32) {
    %c0_i32 = arith.constant 0 : i32
    %c0_i32_0 = arith.constant 0 : i32
    %c0_i32_1 = arith.constant 0 : i32
    return %c0_i32, %c0_i32_0 : i32, i32
  }
  func.func @transform_3(%arg0: i32) -> (i32, i32) {
    %c0_i32 = arith.constant 0 : i32
    %c0_i32_0 = arith.constant 0 : i32
    return %c0_i32, %arg0 : i32, i32
  }
}

</mosaic_0001>

<bundles_post_ra>
// kernel: tpu_custom_call.1
= control target key start
LH: loop header
LB: loop body
LE: loop exit
PB: predicated region body
PF: predicated region fallthrough
CT: control target
= control target key end

     0   :  { %9 = vsyncpa [#allocation4], 0  ;;  %s154_s0 = inlined_call_operand.hbm [shape: f32[8,128], index: 0, kind: input, shape index: {}]   ;;  %s155_s1 = inlined_call_operand.vmem [shape: f32[1,128], index: 1, kind: input, shape index: {}]   ;;  %s156_s2 = inlined_call_operand.<no memory space> [shape: f32[1,1], index: 2, kind: input, shape index: {}]   ;;  %s157_s3 = inlined_call_operand.hbm [shape: f32[1,8], index: 3, kind: output, shape index: {}]  }
   0x1   :  { %10 = vsyncpa [#allocation5], 0  ;;  %s16_s14 = sshll.u32 %s154_s0, 4  ;;  %s120_s15 = smov [#allocation3]   ;;  %s17_s14 = int_to_ptr.hbm [resolvable:$true] %s16_s14 }
   0x2   :  { %s18_s16 = sshll.u32 %s120_s15, 4  ;;  %s19_s16 = int_to_ptr.vmem [resolvable:$true] %s18_s16 }
   0x3   :  { %21 = dma.hbm_to_vmem [thread:$0]  %s17_s14, 128, %s19_s16, [#allocation4]  }
   0x4   :  { %116 = dma.done.wait [#allocation4], 128  }
   0x5   :  { %117 = vsyncadd [#allocation4], 4294967168  ;;  %v30_v0 = vld [vmem:[#allocation3] sm:$0xff]  ;;  %v42_v3 = vlaneseq  ;;  %v39_v4 = vstv %s156_s2  ;;  %s121_s0 = smov [#allocation6]   ;;  %s55_s24 = sshll.u32 %s157_s3, 4  ;;  %vm46_vm0 = vcmask 57344   ;;  %s56_s24 = int_to_ptr.hbm [resolvable:$true] %s55_s24 }
   0x6   :  { %v67_v1 = vld [vmem:[%s155_s1] ss:$0 sm:$0xff]  ;;  %s53_s21 = sshll.u32 %s121_s0, 4  ;;  %s54_s21 = int_to_ptr.vmem [resolvable:$true] %s53_s21 }
   0x7   :  { %v36_v2 = vmul.f32 %v67_v1, %v30_v0  ;;  %v43_v5 = vand.u32 127, %v42_v3 }
   0x9   :  { %37 = vadd.xlane.f32.xlu0 %v36_v2 }
  0x7c   :  { %v38_v6 = vpop.xlane.xlu0 %37 }
  0x7d   :  { %v40_v7 = vadd.f32 %v39_v4, %v38_v6 }
  0x7f   :  { %v44_v8 = vperm.slane %v40_v7, %v43_v5 }
  0x81   :  { %47 = vst.msk [vmem:[#allocation6] sm:$0x1] %vm46_vm0, %v44_v8 }
  0x82   :  { %58 = dma.vmem_to_hbm [thread:$0]  %s54_s21, 16, %s56_s24, [#allocation5]  }
  0x83   :  { %118 = dma.done.wait [#allocation5], 16  }
  0x84   :  { %119 = vsyncadd [#allocation5], 4294967280 }
  0x85   :  { %63 = vsyncpa [#allocation4], 1 }
  0x86   :  { %64 = vsyncpa [#allocation5], 1 }

</bundles_post_ra>
